<compile_context>
chip_gen: v7x
topology: tpu7x:2x2x1
jax: 0.10.0
libtpu: 0.0.40
codegen_flags: <defaults>
</compile_context>

<pallas_src>
import functools

import jax
import jax.numpy as jnp
from jax.experimental import pallas as pl
from jax.experimental.pallas import tpu as pltpu

LANE = 128


def _round_up(v, m):
    return (v + m - 1) // m * m


def _vmem_capacity_bytes():
    try:
        info = pltpu.get_tpu_info()
        cap = getattr(info, "vmem_capacity_bytes", None)
        if cap:
            return int(cap)
    except Exception:
        pass
    return 64 << 20  # conservative default (v7x per-TensorCore VMEM)


def _pad_multiple(dim, compute_dtype):
    # 256-multiples fill the v6e/v7x 256x256 MXU in the compute-bound regime;
    # never inflate tiny dims beyond 128.
    if dim >= 256 and jnp.dtype(compute_dtype).itemsize < 4:
        return 256
    return LANE


def _choose_row_tile(n, tm_target, per_row_bytes, act_budget_bytes):
    """Large row tile bounded by VMEM, rebalanced so the last tile is full."""
    tm_cap = max(int(act_budget_bytes // max(per_row_bytes, 1)), 8)
    tm = int(max(8, min(tm_target, tm_cap, 4096)))
    n_tiles = max(pl.cdiv(n, tm), 1)
    # v7x has 2 TensorCores: keep >= 2 grid steps when N is large enough so the
    # "parallel" row axis can shard across both (harmless on v5e/v6e).
    if n >= 1024:
        n_tiles = max(n_tiles, 2)
    tm_eff = _round_up(pl.cdiv(n, n_tiles), 8)
    return min(tm_eff, _round_up(n, 8))


# ----------------------------------------------------------------------------
# Fused kernel: all layers chained inside one body, one row-tile per grid step.
# refs layout: (x_ref, w0, b0, w1, b1, ..., w_{L-1}, b_{L-1}, o_ref)
# ----------------------------------------------------------------------------
def _mlp_fused_kernel(*refs, num_layers):
    x_ref, o_ref = refs[0], refs[-1]
    wb = refs[1:-1]

    h = x_ref[...]
    for i in range(num_layers):
        w = wb[2 * i][...]
        b = wb[2 * i + 1][...]
        acc = jnp.dot(h, w, preferred_element_type=jnp.float32)  # MXU, f32 acc
        acc = acc + b.astype(jnp.float32)
        if i < num_layers - 1:
            # ReLU (BN affine already folded into the next W,b); cast back to
            # the compute dtype immediately to halve the live VMEM footprint.
            h = jnp.maximum(acc, 0.0).astype(w.dtype)
        else:
            o_ref[...] = acc.astype(o_ref.dtype)


def _fused_mlp_call(x, weights, biases, tm, vmem_limit, single_buffer_params):
    """One pallas_call over row tiles; weights/biases resident in VMEM."""
    n, cin = x.shape
    num_layers = len(weights)
    cout = weights[-1].shape[1]

    # Resident parameters: constant index map; optionally single-buffered so
    # they are not needlessly double-buffered (halves their VMEM footprint).
    param_kwargs = (
        dict(pipeline_mode=pl.Buffered(1)) if single_buffer_params else {})

    in_specs = [pl.BlockSpec((tm, cin), lambda i: (i, 0))]
    args = [x]
    for w, b in zip(weights, biases):
        in_specs.append(pl.BlockSpec(w.shape, lambda i: (0, 0), **param_kwargs))
        in_specs.append(pl.BlockSpec(b.shape, lambda i: (0, 0), **param_kwargs))
        args.append(w)
        args.append(b)

    kernel = functools.partial(_mlp_fused_kernel, num_layers=num_layers)
    return pl.pallas_call(
        kernel,
        out_shape=jax.ShapeDtypeStruct((n, cout), x.dtype),
        grid=(pl.cdiv(n, tm),),                    # partial edge block is masked
        in_specs=in_specs,
        out_specs=pl.BlockSpec((tm, cout), lambda i: (i, 0)),
        compiler_params=pltpu.CompilerParams(
            dimension_semantics=("parallel",),     # rows are independent
            vmem_limit_bytes=int(vmem_limit)),
    )(*args)


# ----------------------------------------------------------------------------
# Parameter construction (matches the PyTorch module's shapes; eval mode)
# ----------------------------------------------------------------------------
def init_mlp_params(key, in_channels, hidden_channels, num_layers):
    """Deterministic synthetic init matching the PyTorch module's shapes."""
    params = {"lins": [], "bns": []}
    dims = [in_channels] + [hidden_channels] * num_layers
    for i in range(num_layers):
        key, kw, kb = jax.random.split(key, 3)
        cin, cout = dims[i], dims[i + 1]
        bound = 1.0 / jnp.sqrt(cin)
        # stored transposed relative to torch: (cin, cout)
        w = jax.random.uniform(kw, (cin, cout), jnp.float32, -bound, bound)
        b = jax.random.uniform(kb, (1, cout), jnp.float32, -bound, bound)
        params["lins"].append((w, b))
    for _ in range(max(num_layers - 1, 0)):
        key, kg, kb, km, kv = jax.random.split(key, 5)
        gamma = 1.0 + 0.1 * jax.random.normal(kg, (1, hidden_channels), jnp.float32)
        beta = 0.1 * jax.random.normal(kb, (1, hidden_channels), jnp.float32)
        rmean = 0.1 * jax.random.normal(km, (1, hidden_channels), jnp.float32)
        rvar = jnp.abs(1.0 + 0.1 * jax.random.normal(kv, (1, hidden_channels),
                                                     jnp.float32))
        params["bns"].append((gamma, beta, rmean, rvar))
    return params


def mlp_forward(params, x, eps=1e-5, compute_dtype=None, tm=1024):
    """Eval-mode forward: BN uses running stats, dropout is identity."""
    if compute_dtype is None:
        compute_dtype = x.dtype
    compute_dtype = jnp.dtype(compute_dtype)
    num_layers = len(params["lins"])

    # 1) Fold each eval-mode BN affine into the FOLLOWING Linear layer:
    #    (y*scale + shift) @ W + b == y @ (diag(scale) @ W) + (shift @ W + b)
    weights, biases = [], []
    for i in range(num_layers):
        w, b = params["lins"][i]
        if i > 0:
            gamma, beta, rmean, rvar = params["bns"][i - 1]
            scale = gamma / jnp.sqrt(rvar + eps)        # (1, H)
            shift = beta - rmean * scale                # (1, H)
            b = shift @ w + b                           # uses ORIGINAL w
            w = scale.reshape(-1, 1) * w                # diag(scale) @ W
        weights.append(w)
        biases.append(b)

    # 2) Zero-pad only the INTERMEDIATE hidden dims to lane-dense multiples.
    #    Input dim (true cin) and final output dim (true cout) are kept as-is
    #    so no wrapper-side pad of x / slice of the output is needed.  Padded
    #    columns stay zero through bias+ReLU and hit zero rows of the next
    #    padded weight.
    dims = [w.shape[0] for w in weights] + [weights[-1].shape[1]]
    padded_dims = list(dims)
    for j in range(1, num_layers):                      # intermediate dims only
        padded_dims[j] = _round_up(dims[j], _pad_multiple(dims[j], compute_dtype))

    padded_w, padded_b = [], []
    for i, (w, b) in enumerate(zip(weights, biases)):
        cin_p, cout_p = padded_dims[i], padded_dims[i + 1]
        padded_w.append(jnp.pad(
            w, ((0, cin_p - w.shape[0]), (0, cout_p - w.shape[1]))
        ).astype(compute_dtype))
        padded_b.append(jnp.pad(
            b, ((0, 0), (0, cout_p - b.shape[1]))).astype(compute_dtype))

    # 3) Row tile from a VMEM budget + explicit scoped-VMEM limit.
    n, cin = x.shape
    cout = padded_dims[-1]
    isz = compute_dtype.itemsize
    weight_bytes = (sum(w.size for w in padded_w) +
                    sum(b.size for b in padded_b)) * isz
    vmem_cap = _vmem_capacity_bytes()
    act_budget = max(vmem_cap - 2 * weight_bytes - (6 << 20), 4 << 20)
    max_width = max(padded_dims)
    per_row_bytes = 2 * cin * isz + 2 * cout * isz + 3 * max_width * 4
    tm_eff = _choose_row_tile(n, tm, per_row_bytes, act_budget)

    vmem_limit = min(vmem_cap,
                     max(32 << 20,
                         2 * weight_bytes + tm_eff * per_row_bytes + (4 << 20)))

    xc = x.astype(compute_dtype)   # no-op when x is already the compute dtype
    try:
        out = _fused_mlp_call(xc, padded_w, padded_b, tm_eff, vmem_limit, True)
        jax.block_until_ready(out)
    except Exception:
        # pipeline_mode=pl.Buffered(1) unavailable on this JAX/Mosaic version:
        # fall back to default (double-buffered) resident parameters.
        out = _fused_mlp_call(xc, padded_w, padded_b, tm_eff, vmem_limit, False)
    return out


# ----------------------------------------------------------------------------
if __name__ == "__main__":
    key = jax.random.PRNGKey(0)
    in_channels, hidden_channels, num_layers, dropout = 16, 32, 3, 0.5
    N = 8  # number of nodes / rows

    kp, kx, kx2 = jax.random.split(key, 3)
    params = init_mlp_params(kp, in_channels, hidden_channels, num_layers)
    x = jax.random.normal(kx, (N, in_channels), jnp.float32)

    def reference(params, x):
        ref = x
        L = len(params["lins"])
        for i in range(L - 1):
            w, b = params["lins"][i]
            g, bt, rm, rv = params["bns"][i]
            ref = jnp.maximum(ref @ w + b, 0.0)
            ref = (ref - rm) / jnp.sqrt(rv + 1e-5) * g + bt
        w, b = params["lins"][-1]
        return ref @ w + b

    # f32 path (exact match to the eval-mode reference)
    out = mlp_forward(params, x)
    jax.block_until_ready(out)
    ref = reference(params, x)
    assert out.shape == ref.shape
    assert jnp.allclose(out, ref, atol=1e-4, rtol=1e-4), "f32 mismatch"

    # Ragged row count exercises the cdiv edge-block masking (no wrapper pad,
    # no output slice).
    N2 = 13
    x2 = jax.random.normal(kx2, (N2, in_channels), jnp.float32)
    out2 = mlp_forward(params, x2)
    jax.block_until_ready(out2)
    ref2 = reference(params, x2)
    assert out2.shape == ref2.shape
    assert jnp.all(jnp.isfinite(out2))
    assert jnp.allclose(out2, ref2, atol=1e-4, rtol=1e-4), "edge-block mismatch"

    # bf16 compute path (halves HBM activation/weight bytes; the natural
    # default on bandwidth-bound v5e).  f32 MXU accumulation inside.
    out_bf16 = mlp_forward(params, x.astype(jnp.bfloat16),
                           compute_dtype=jnp.bfloat16)
    jax.block_until_ready(out_bf16)
    assert jnp.all(jnp.isfinite(out_bf16.astype(jnp.float32)))
    assert jnp.allclose(out_bf16.astype(jnp.float32), ref,
                        atol=0.15, rtol=0.15), "bf16 mismatch"

    print("KERNEL_OK")
</pallas_src>

<mosaic_0001>
module attributes {stable_mosaic.version = 11 : i64} {
  func.func @_mlp_fused_kernel(%arg0: i32, %arg1: memref<8x16xf32, #tpu.memory_space<vmem>>, %arg2: memref<16x128xf32, #tpu.memory_space<vmem>>, %arg3: memref<1x128xf32, #tpu.memory_space<vmem>>, %arg4: memref<128x128xf32, #tpu.memory_space<vmem>>, %arg5: memref<1x128xf32, #tpu.memory_space<vmem>>, %arg6: memref<128x32xf32, #tpu.memory_space<vmem>>, %arg7: memref<1x32xf32, #tpu.memory_space<vmem>>, %arg8: memref<8x32xf32, #tpu.memory_space<vmem>>) attributes {dimension_semantics = [#tpu.dimension_semantics<parallel>], iteration_bounds = array<i64: 1>, scalar_prefetch = 0 : i64, scratch_operands = 0 : i64, tpu.core_type = #tpu.core_type<tc>, window_params = [{transform_indices = @transform_0, window_bounds = array<i64: 8, 16>}, {pipeline_mode = #tpu.pipeline_mode<synchronous>, transform_indices = @transform_1, window_bounds = array<i64: 16, 128>}, {pipeline_mode = #tpu.pipeline_mode<synchronous>, transform_indices = @transform_2, window_bounds = array<i64: 1, 128>}, {pipeline_mode = #tpu.pipeline_mode<synchronous>, transform_indices = @transform_3, window_bounds = array<i64: 128, 128>}, {pipeline_mode = #tpu.pipeline_mode<synchronous>, transform_indices = @transform_4, window_bounds = array<i64: 1, 128>}, {pipeline_mode = #tpu.pipeline_mode<synchronous>, transform_indices = @transform_5, window_bounds = array<i64: 128, 32>}, {pipeline_mode = #tpu.pipeline_mode<synchronous>, transform_indices = @transform_6, window_bounds = array<i64: 1, 32>}, {transform_indices = @transform_7, window_bounds = array<i64: 8, 32>}]} {
    %c0 = arith.constant 0 : index
    %c0_0 = arith.constant 0 : index
    %0 = vector.load %arg1[%c0, %c0_0] : memref<8x16xf32, #tpu.memory_space<vmem>>, vector<8x16xf32>
    %c0_1 = arith.constant 0 : index
    %c0_2 = arith.constant 0 : index
    %1 = vector.load %arg2[%c0_1, %c0_2] : memref<16x128xf32, #tpu.memory_space<vmem>>, vector<16x128xf32>
    %c0_3 = arith.constant 0 : index
    %c0_4 = arith.constant 0 : index
    %2 = vector.load %arg3[%c0_3, %c0_4] : memref<1x128xf32, #tpu.memory_space<vmem>>, vector<1x128xf32>
    %cst = arith.constant dense<0.000000e+00> : vector<8x128xf32>
    %3 = tpu.matmul %0, %1, %cst {dimension_numbers = #tpu.dot_dimension_numbers<[1], [0], [0], [1], [0, 0, 1, 1], [], []>} : vector<8x16xf32>, vector<16x128xf32>, vector<8x128xf32> -> vector<8x128xf32>
    %4 = vector.broadcast %2 : vector<1x128xf32> to vector<8x128xf32>
    %5 = arith.addf %3, %4 : vector<8x128xf32>
    %cst_5 = arith.constant 0.000000e+00 : f32
    %6 = vector.broadcast %cst_5 : f32 to vector<8x128xf32>
    %7 = arith.maximumf %5, %6 : vector<8x128xf32>
    %c0_6 = arith.constant 0 : index
    %c0_7 = arith.constant 0 : index
    %8 = vector.load %arg4[%c0_6, %c0_7] : memref<128x128xf32, #tpu.memory_space<vmem>>, vector<128x128xf32>
    %c0_8 = arith.constant 0 : index
    %c0_9 = arith.constant 0 : index
    %9 = vector.load %arg5[%c0_8, %c0_9] : memref<1x128xf32, #tpu.memory_space<vmem>>, vector<1x128xf32>
    %cst_10 = arith.constant dense<0.000000e+00> : vector<8x128xf32>
    %10 = tpu.matmul %7, %8, %cst_10 {dimension_numbers = #tpu.dot_dimension_numbers<[1], [0], [0], [1], [0, 0, 1, 1], [], []>} : vector<8x128xf32>, vector<128x128xf32>, vector<8x128xf32> -> vector<8x128xf32>
    %11 = vector.broadcast %9 : vector<1x128xf32> to vector<8x128xf32>
    %12 = arith.addf %10, %11 : vector<8x128xf32>
    %cst_11 = arith.constant 0.000000e+00 : f32
    %13 = vector.broadcast %cst_11 : f32 to vector<8x128xf32>
    %14 = arith.maximumf %12, %13 : vector<8x128xf32>
    %c0_12 = arith.constant 0 : index
    %c0_13 = arith.constant 0 : index
    %15 = vector.load %arg6[%c0_12, %c0_13] : memref<128x32xf32, #tpu.memory_space<vmem>>, vector<128x32xf32>
    %c0_14 = arith.constant 0 : index
    %c0_15 = arith.constant 0 : index
    %16 = vector.load %arg7[%c0_14, %c0_15] : memref<1x32xf32, #tpu.memory_space<vmem>>, vector<1x32xf32>
    %cst_16 = arith.constant dense<0.000000e+00> : vector<8x32xf32>
    %17 = tpu.matmul %14, %15, %cst_16 {dimension_numbers = #tpu.dot_dimension_numbers<[1], [0], [0], [1], [0, 0, 1, 1], [], []>} : vector<8x128xf32>, vector<128x32xf32>, vector<8x32xf32> -> vector<8x32xf32>
    %18 = vector.broadcast %16 : vector<1x32xf32> to vector<8x32xf32>
    %19 = arith.addf %17, %18 : vector<8x32xf32>
    %c0_17 = arith.constant 0 : index
    %c0_18 = arith.constant 0 : index
    %20 = vector.load %arg8[%c0_17, %c0_18] : memref<8x32xf32, #tpu.memory_space<vmem>>, vector<8x32xf32>
    tpu.vector_store %arg8[%c0_17, %c0_18], %19 {strides = array<i32>} : memref<8x32xf32, #tpu.memory_space<vmem>>, vector<8x32xf32>,
    return
  }
  func.func @transform_0(%arg0: i32) -> (i32, i32) {
    %c0_i32 = arith.constant 0 : i32
    %c0_i32_0 = arith.constant 0 : i32
    return %arg0, %c0_i32 : i32, i32
  }
  func.func @transform_1(%arg0: i32) -> (i32, i32) {
    %c0_i32 = arith.constant 0 : i32
    %c0_i32_0 = arith.constant 0 : i32
    %c0_i32_1 = arith.constant 0 : i32
    return %c0_i32, %c0_i32_0 : i32, i32
  }
  func.func @transform_2(%arg0: i32) -> (i32, i32) {
    %c0_i32 = arith.constant 0 : i32
    %c0_i32_0 = arith.constant 0 : i32
    %c0_i32_1 = arith.constant 0 : i32
    return %c0_i32, %c0_i32_0 : i32, i32
  }
  func.func @transform_3(%arg0: i32) -> (i32, i32) {
    %c0_i32 = arith.constant 0 : i32
    %c0_i32_0 = arith.constant 0 : i32
    %c0_i32_1 = arith.constant 0 : i32
    return %c0_i32, %c0_i32_0 : i32, i32
  }
  func.func @transform_4(%arg0: i32) -> (i32, i32) {
    %c0_i32 = arith.constant 0 : i32
    %c0_i32_0 = arith.constant 0 : i32
    %c0_i32_1 = arith.constant 0 : i32
    return %c0_i32, %c0_i32_0 : i32, i32
  }
  func.func @transform_5(%arg0: i32) -> (i32, i32) {
    %c0_i32 = arith.constant 0 : i32
    %c0_i32_0 = arith.constant 0 : i32
    %c0_i32_1 = arith.constant 0 : i32
    return %c0_i32, %c0_i32_0 : i32, i32
  }
  func.func @transform_6(%arg0: i32) -> (i32, i32) {
    %c0_i32 = arith.constant 0 : i32
    %c0_i32_0 = arith.constant 0 : i32
    %c0_i32_1 = arith.constant 0 : i32
    return %c0_i32, %c0_i32_0 : i32, i32
  }
  func.func @transform_7(%arg0: i32) -> (i32, i32) {
    %c0_i32 = arith.constant 0 : i32
    %c0_i32_0 = arith.constant 0 : i32
    return %arg0, %c0_i32 : i32, i32
  }
}

module attributes {stable_mosaic.version = 11 : i64} {
  func.func @_mlp_fused_kernel(%arg0: i32, %arg1: memref<8x16xf32, #tpu.memory_space<vmem>>, %arg2: memref<16x128xf32, #tpu.memory_space<vmem>>, %arg3: memref<1x128xf32, #tpu.memory_space<vmem>>, %arg4: memref<128x128xf32, #tpu.memory_space<vmem>>, %arg5: memref<1x128xf32, #tpu.memory_space<vmem>>, %arg6: memref<128x32xf32, #tpu.memory_space<vmem>>, %arg7: memref<1x32xf32, #tpu.memory_space<vmem>>, %arg8: memref<8x32xf32, #tpu.memory_space<vmem>>) attributes {dimension_semantics = [#tpu.dimension_semantics<parallel>], iteration_bounds = array<i64: 1>, scalar_prefetch = 0 : i64, scratch_operands = 0 : i64, tpu.core_type = #tpu.core_type<tc>, window_params = [{transform_indices = @transform_0, window_bounds = array<i64: 8, 16>}, {pipeline_mode = #tpu.pipeline_mode<synchronous>, transform_indices = @transform_1, window_bounds = array<i64: 16, 128>}, {pipeline_mode = #tpu.pipeline_mode<synchronous>, transform_indices = @transform_2, window_bounds = array<i64: 1, 128>}, {pipeline_mode = #tpu.pipeline_mode<synchronous>, transform_indices = @transform_3, window_bounds = array<i64: 128, 128>}, {pipeline_mode = #tpu.pipeline_mode<synchronous>, transform_indices = @transform_4, window_bounds = array<i64: 1, 128>}, {pipeline_mode = #tpu.pipeline_mode<synchronous>, transform_indices = @transform_5, window_bounds = array<i64: 128, 32>}, {pipeline_mode = #tpu.pipeline_mode<synchronous>, transform_indices = @transform_6, window_bounds = array<i64: 1, 32>}, {transform_indices = @transform_7, window_bounds = array<i64: 8, 32>}]} {
    %c0 = arith.constant 0 : index
    %c0_0 = arith.constant 0 : index
    %0 = vector.load %arg1[%c0, %c0_0] : memref<8x16xf32, #tpu.memory_space<vmem>>, vector<8x16xf32>
    %c0_1 = arith.constant 0 : index
    %c0_2 = arith.constant 0 : index
    %1 = vector.load %arg2[%c0_1, %c0_2] : memref<16x128xf32, #tpu.memory_space<vmem>>, vector<16x128xf32>
    %c0_3 = arith.constant 0 : index
    %c0_4 = arith.constant 0 : index
    %2 = vector.load %arg3[%c0_3, %c0_4] : memref<1x128xf32, #tpu.memory_space<vmem>>, vector<1x128xf32>
    %cst = arith.constant dense<0.000000e+00> : vector<8x128xf32>
    %3 = tpu.matmul %0, %1, %cst {dimension_numbers = #tpu.dot_dimension_numbers<[1], [0], [0], [1], [0, 0, 1, 1], [], []>} : vector<8x16xf32>, vector<16x128xf32>, vector<8x128xf32> -> vector<8x128xf32>
    %4 = vector.broadcast %2 : vector<1x128xf32> to vector<8x128xf32>
    %5 = arith.addf %3, %4 : vector<8x128xf32>
    %cst_5 = arith.constant 0.000000e+00 : f32
    %6 = vector.broadcast %cst_5 : f32 to vector<8x128xf32>
    %7 = arith.maximumf %5, %6 : vector<8x128xf32>
    %c0_6 = arith.constant 0 : index
    %c0_7 = arith.constant 0 : index
    %8 = vector.load %arg4[%c0_6, %c0_7] : memref<128x128xf32, #tpu.memory_space<vmem>>, vector<128x128xf32>
    %c0_8 = arith.constant 0 : index
    %c0_9 = arith.constant 0 : index
    %9 = vector.load %arg5[%c0_8, %c0_9] : memref<1x128xf32, #tpu.memory_space<vmem>>, vector<1x128xf32>
    %cst_10 = arith.constant dense<0.000000e+00> : vector<8x128xf32>
    %10 = tpu.matmul %7, %8, %cst_10 {dimension_numbers = #tpu.dot_dimension_numbers<[1], [0], [0], [1], [0, 0, 1, 1], [], []>} : vector<8x128xf32>, vector<128x128xf32>, vector<8x128xf32> -> vector<8x128xf32>
    %11 = vector.broadcast %9 : vector<1x128xf32> to vector<8x128xf32>
    %12 = arith.addf %10, %11 : vector<8x128xf32>
    %cst_11 = arith.constant 0.000000e+00 : f32
    %13 = vector.broadcast %cst_11 : f32 to vector<8x128xf32>
    %14 = arith.maximumf %12, %13 : vector<8x128xf32>
    %c0_12 = arith.constant 0 : index
    %c0_13 = arith.constant 0 : index
    %15 = vector.load %arg6[%c0_12, %c0_13] : memref<128x32xf32, #tpu.memory_space<vmem>>, vector<128x32xf32>
    %c0_14 = arith.constant 0 : index
    %c0_15 = arith.constant 0 : index
    %16 = vector.load %arg7[%c0_14, %c0_15] : memref<1x32xf32, #tpu.memory_space<vmem>>, vector<1x32xf32>
    %cst_16 = arith.constant dense<0.000000e+00> : vector<8x32xf32>
    %17 = tpu.matmul %14, %15, %cst_16 {dimension_numbers = #tpu.dot_dimension_numbers<[1], [0], [0], [1], [0, 0, 1, 1], [], []>} : vector<8x128xf32>, vector<128x32xf32>, vector<8x32xf32> -> vector<8x32xf32>
    %18 = vector.broadcast %16 : vector<1x32xf32> to vector<8x32xf32>
    %19 = arith.addf %17, %18 : vector<8x32xf32>
    %c0_17 = arith.constant 0 : index
    %c0_18 = arith.constant 0 : index
    %20 = vector.load %arg8[%c0_17, %c0_18] : memref<8x32xf32, #tpu.memory_space<vmem>>, vector<8x32xf32>
    tpu.vector_store %arg8[%c0_17, %c0_18], %19 {strides = array<i32>} : memref<8x32xf32, #tpu.memory_space<vmem>>, vector<8x32xf32>,
    return
  }
  func.func @transform_0(%arg0: i32) -> (i32, i32) {
    %c0_i32 = arith.constant 0 : i32
    %c0_i32_0 = arith.constant 0 : i32
    return %arg0, %c0_i32 : i32, i32
  }
  func.func @transform_1(%arg0: i32) -> (i32, i32) {
    %c0_i32 = arith.constant 0 : i32
    %c0_i32_0 = arith.constant 0 : i32
    %c0_i32_1 = arith.constant 0 : i32
    return %c0_i32, %c0_i32_0 : i32, i32
  }
  func.func @transform_2(%arg0: i32) -> (i32, i32) {
    %c0_i32 = arith.constant 0 : i32
    %c0_i32_0 = arith.constant 0 : i32
    %c0_i32_1 = arith.constant 0 : i32
    return %c0_i32, %c0_i32_0 : i32, i32
  }
  func.func @transform_3(%arg0: i32) -> (i32, i32) {
    %c0_i32 = arith.constant 0 : i32
    %c0_i32_0 = arith.constant 0 : i32
    %c0_i32_1 = arith.constant 0 : i32
    return %c0_i32, %c0_i32_0 : i32, i32
  }
  func.func @transform_4(%arg0: i32) -> (i32, i32) {
    %c0_i32 = arith.constant 0 : i32
    %c0_i32_0 = arith.constant 0 : i32
    %c0_i32_1 = arith.constant 0 : i32
    return %c0_i32, %c0_i32_0 : i32, i32
  }
  func.func @transform_5(%arg0: i32) -> (i32, i32) {
    %c0_i32 = arith.constant 0 : i32
    %c0_i32_0 = arith.constant 0 : i32
    %c0_i32_1 = arith.constant 0 : i32
    return %c0_i32, %c0_i32_0 : i32, i32
  }
  func.func @transform_6(%arg0: i32) -> (i32, i32) {
    %c0_i32 = arith.constant 0 : i32
    %c0_i32_0 = arith.constant 0 : i32
    %c0_i32_1 = arith.constant 0 : i32
    return %c0_i32, %c0_i32_0 : i32, i32
  }
  func.func @transform_7(%arg0: i32) -> (i32, i32) {
    %c0_i32 = arith.constant 0 : i32
    %c0_i32_0 = arith.constant 0 : i32
    return %arg0, %c0_i32 : i32, i32
  }
}

</mosaic_0001>

<bundles_post_ra>
// kernel: tpu_custom_call.1
= control target key start
LH: loop header
LB: loop body
LE: loop exit
PB: predicated region body
PF: predicated region fallthrough
CT: control target
= control target key end

     0   :  { %v512_v2 = vmov 0.0|0.0   ;;  %vm513_vm0 = vmmov 0   ;;  %v514_v4 = vmov 0.0   ;;  %vm37_vm1 = vcmask 130048   ;;  %s702_s0 = inlined_call_operand.vmem [shape: f32[8,16], index: 0, kind: input, shape index: {}]   ;;  %s703_s1 = inlined_call_operand.vmem [shape: f32[16,128], index: 1, kind: input, shape index: {}]   ;;  %s704_s2 = inlined_call_operand.vmem [shape: f32[1,128], index: 2, kind: input, shape index: {}]   ;;  %s705_s3 = inlined_call_operand.vmem [shape: f32[128,128], index: 3, kind: input, shape index: {}]   ;;  %s706_s4 = inlined_call_operand.vmem [shape: f32[1,128], index: 4, kind: input, shape index: {}]   ;;  %s707_s5 = inlined_call_operand.vmem [shape: f32[128,32], index: 5, kind: input, shape index: {}]   ;;  %s708_s6 = inlined_call_operand.vmem [shape: f32[1,32], index: 6, kind: input, shape index: {}]   ;;  %s709_s7 = inlined_call_operand.hbm [shape: f32[8,32], index: 7, kind: output, shape index: {}]  }
   0x1   :  { %v28_v0 = vld [vmem:[%s703_s1] sm:$0xff]  ;;  %v29_v1 = vld [vmem:[%s703_s1 + $0x8] sm:$0xff]  ;;  %433 = vmatprep.subr.bf16.mxu0 %v512_v2  ;;  %360 = vmatprep.mubr.msk.f32.mxu0 %vm513_vm0, %v514_v4  ;;  %v114_v7 = vld [vmem:[%s705_s3 + $0x10] sm:$0xff] }
   0x2   :  { %v434_v3 = vpack.c.bf16 %v29_v1, %v28_v0  ;;  %v112_v5 = vld [vmem:[%s705_s3] sm:$0xff]  ;;  %v113_v6 = vld [vmem:[%s705_s3 + $0x8] sm:$0xff]  ;;  %436 = vmatprep.subr.bf16.mxu1 %v512_v2  ;;  %v115_v9 = vld [vmem:[%s705_s3 + $0x18] sm:$0xff]  ;;  %395 = vmatprep.mubr.msk.f32.mxu1 %vm513_vm0, %v514_v4 }
   0x3   :  { %v437_v8 = vpack.c.bf16 %v113_v6, %v112_v5  ;;  %v27_v10 = vld [vmem:[%s702_s0] sm:$0xff]  ;;  %v440_v11 = vpack.c.bf16 %v115_v9, %v114_v7  ;;  %v117_v13 = vld [vmem:[%s705_s3 + $0x28] sm:$0xff] }
   0x4   :  { %435 = vmatpush3.bf16.msra.mxu0 %v434_v3  ;;  %v116_v12 = vld [vmem:[%s705_s3 + $0x20] sm:$0xff] }
   0x5   :  { %438 = vmatpush3.bf16.msra.mxu1 %v437_v8  ;;  %460 = vmatprep.subr.bf16.mxu0 %v512_v2 }
   0x6   :  { %439 = vmatprep.subr.bf16.mxu1 %v512_v2 }
   0x7   :  { %361 = vmatmul.mubr.msk.f32.vlgmr.msra.gmra.mrb[0].mxu0 %vm37_vm1, %v27_v10 }
   0x8   :  { %12 = vsyncpa [#allocation3], 0  ;;  %430 = vmatprep.mubr.msk.f32.mxu0 %vm513_vm0, %v514_v4  ;;  %v443_v14 = vpack.c.bf16 %v117_v13, %v116_v12  ;;  %v118_v15 = vld [vmem:[%s705_s3 + $0x30] sm:$0xff]  ;;  %v119_v16 = vld [vmem:[%s705_s3 + $0x38] sm:$0xff]  ;;  %s515_s22 = smov [#allocation2]   ;;  %vm299_vm2 = vcmask 261120  }
   0x9   :  { %441 = vmatpush3.bf16.msra.mxu1 %v440_v11  ;;  %v446_v17 = vpack.c.bf16 %v119_v16, %v118_v15  ;;  %v120_v18 = vld [vmem:[%s705_s3 + $0x40] sm:$0xff]  ;;  %v121_v19 = vld [vmem:[%s705_s3 + $0x48] sm:$0xff]  ;;  %v122_v21 = vld [vmem:[%s705_s3 + $0x50] sm:$0xff]  ;;  %s307_s23 = sshll.u32 %s515_s22, 4  ;;  %s308_s23 = int_to_ptr.vmem [resolvable:$true] %s307_s23 }
   0xa   :  { %442 = vmatprep.subr.bf16.mxu1 %v512_v2  ;;  %v449_v20 = vpack.c.bf16 %v121_v19, %v120_v18  ;;  %v123_v22 = vld [vmem:[%s705_s3 + $0x58] sm:$0xff]  ;;  %v124_v24 = vld [vmem:[%s705_s3 + $0x60] sm:$0xff]  ;;  %v125_v25 = vld [vmem:[%s705_s3 + $0x68] sm:$0xff]  ;;  %p493_p1 = scmp.lt.s32.totalorder %s308_s23, %s308_s23 }
   0xb   :  { %v452_v23 = vpack.c.bf16 %v123_v22, %v122_v21  ;;  %v455_v26 = vpack.c.bf16 %v125_v25, %v124_v24  ;;  %v126_v27 = vld [vmem:[%s705_s3 + $0x70] sm:$0xff]  ;;  %v127_v28 = vld [vmem:[%s705_s3 + $0x78] sm:$0xff]  ;;  %v206_v30 = vld [vmem:[%s707_s5] sm:$0xff] }
   0xc   :  { %v458_v29 = vpack.c.bf16 %v127_v28, %v126_v27  ;;  %v207_v31 = vld [vmem:[%s707_s5 + $0x8] sm:$0xff]  ;;  %v208_v32 = vld [vmem:[%s707_s5 + $0x10] sm:$0xff]  ;;  %v209_v34 = vld [vmem:[%s707_s5 + $0x18] sm:$0xff] }
   0xd   :  { %444 = vmatpush3.bf16.msra.mxu1 %v443_v14  ;;  %v461_v33 = vpack.c.bf16 %v207_v31, %v206_v30  ;;  %v464_v35 = vpack.c.bf16 %v209_v34, %v208_v32  ;;  %v210_v36 = vld [vmem:[%s707_s5 + $0x20] sm:$0xff]  ;;  %v211_v37 = vld [vmem:[%s707_s5 + $0x28] sm:$0xff]  ;;  %v212_v39 = vld [vmem:[%s707_s5 + $0x30] sm:$0xff] }
   0xe   :  { %445 = vmatprep.subr.bf16.mxu1 %v512_v2  ;;  %v467_v38 = vpack.c.bf16 %v211_v37, %v210_v36  ;;  %v213_v40 = vld [vmem:[%s707_s5 + $0x38] sm:$0xff]  ;;  %v214_v42 = vld [vmem:[%s707_s5 + $0x40] sm:$0xff]  ;;  %v215_v43 = vld [vmem:[%s707_s5 + $0x48] sm:$0xff] }
   0xf   :  { %462 = vmatpush3.bf16.msra.mxu0 %v461_v33  ;;  %v470_v41 = vpack.c.bf16 %v213_v40, %v212_v39  ;;  %v473_v44 = vpack.c.bf16 %v215_v43, %v214_v42  ;;  %v216_v45 = vld [vmem:[%s707_s5 + $0x50] sm:$0xff]  ;;  %v217_v46 = vld [vmem:[%s707_s5 + $0x58] sm:$0xff]  ;;  %v218_v48 = vld [vmem:[%s707_s5 + $0x60] sm:$0xff] }
  0x10   :  { %463 = vmatprep.subr.bf16.mxu0 %v512_v2  ;;  %v476_v47 = vpack.c.bf16 %v217_v46, %v216_v45  ;;  %v219_v49 = vld [vmem:[%s707_s5 + $0x68] sm:$0xff]  ;;  %v315_v51 = vld [vmem:[%s704_s2] ss:$0 sm:$0xff]  ;;  %v220_v56 = vld [vmem:[%s707_s5 + $0x70] sm:$0xff] }
  0x11   :  { %447 = vmatpush3.bf16.msra.mxu1 %v446_v17  ;;  %v479_v50 = vpack.c.bf16 %v219_v49, %v218_v48  ;;  %v221_v57 = vld [vmem:[%s707_s5 + $0x78] sm:$0xff]  ;;  %v317_v59 = vld [vmem:[%s706_s4] ss:$0 sm:$0xff]  ;;  %s488_s5 = scalar_lea.vmem %s308_s23, 128 }
  0x12   :  { %448 = vmatprep.subr.bf16.mxu1 %v512_v2  ;;  %v482_v58 = vpack.c.bf16 %v221_v57, %v220_v56  ;;  %v318_v0 = vld [vmem:[%s708_s6] ss:$0 sm:$0xff]  ;;  %p489_p0 = scmp.ne.s32.totalorder %s308_s23, %s488_s5  ;;  %p494_p2 = scmp.lt.s32.totalorder %s488_s5, %s488_s5 }
  0x13   :  { %465 = vmatpush3.bf16.msra.mxu0 %v464_v35 }
  0x14   :  { %466 = vmatprep.subr.bf16.mxu0 %v512_v2  ;;  %p495_p3 = por %p494_p2, %p493_p1 }
  0x15   :  { %450 = vmatpush3.bf16.msra.mxu1 %v449_v20 }
  0x16   :  { %451 = vmatprep.subr.bf16.mxu1 %v512_v2  ;;  %p496_p4 = pnand %p495_p3, %p489_p0 }
  0x17   :  { %468 = vmatpush3.bf16.msra.mxu0 %v467_v38 }
  0x18   :  { %469 = vmatprep.subr.bf16.mxu0 %v512_v2 }
  0x19   :  { %453 = vmatpush3.bf16.msra.mxu1 %v452_v23 }
  0x1a   :  { %454 = vmatprep.subr.bf16.mxu1 %v512_v2 }
  0x1b   :  { %471 = vmatpush3.bf16.msra.mxu0 %v470_v41 }
  0x1c   :  { %472 = vmatprep.subr.bf16.mxu0 %v512_v2 }
  0x1d   :  { %456 = vmatpush3.bf16.msra.mxu1 %v455_v26 }
  0x1e   :  { %457 = vmatprep.subr.bf16.mxu1 %v512_v2 }
  0x1f   :  { %474 = vmatpush3.bf16.msra.mxu0 %v473_v44 }
  0x20   :  { %475 = vmatprep.subr.bf16.mxu0 %v512_v2 }
  0x21   :  { %459 = vmatpush3.bf16.msra.mxu1 %v458_v29 }
  0x23   :  { %477 = vmatpush3.bf16.msra.mxu0 %v476_v47 }
  0x24   :  { %478 = vmatprep.subr.bf16.mxu0 %v512_v2 }
  0x27   :  { %480 = vmatpush3.bf16.msra.mxu0 %v479_v50 }
  0x28   :  { %481 = vmatprep.subr.bf16.mxu0 %v512_v2 }
  0x2b   :  { %483 = vmatpush3.bf16.msra.mxu0 %v482_v58 }
  0xda   :  { %v107_v52 = vpop.f32.mrb[0].mxu0 }
  0xdb   :  { %v108_v53 = vadd.f32 %v315_v51, %v107_v52  ;;  %v362_v54 = vpop.f32.mrb[1].mxu0 }
  0xdd   :  { %v111_v55 = vmax.f32 %v108_v53, 0.0 }
  0xdf   :  { %396 = vmatmul.mubr.f32.vlgmr.msra.gmra.mrb[0].mxu1 %v111_v55 }
 0x1b2   :  { %v201_v60 = vpop.f32.mrb[0].mxu1 }
 0x1b3   :  { %v202_v61 = vadd.f32 %v317_v59, %v201_v60  ;;  %v397_v62 = vpop.f32.mrb[1].mxu1 }
 0x1b5   :  { %v205_v63 = vmax.f32 %v202_v61, 0.0 }
 0x1b7   :  { %431 = vmatmul.mubr.f32.vlgmr.msra.gmra.mrb[2].mxu0 %v205_v63 }
 0x28a   :  { %v295_v1 = vpop.f32.mrb[2].mxu0 }
 0x28b   :  { %v296_v2 = vadd.f32 %v318_v0, %v295_v1  ;;  %v432_v3 = vpop.f32.mrb[3].mxu0 }
 0x28d   :  { %300 = vst.msk [vmem:[#allocation2] sm:$0xff] %vm299_vm2, %v296_v2 }
 0x28e   :  { %499 = shalt.err (!%p496_p4)
}
 0x28f   :  { %s500_s25 = scalar_lea.hbm %s709_s7, 128 }
 0x290   :  { %p501_p5 = scmp.ne.s32.totalorder %s709_s7, %s500_s25  ;;  %p504_p6 = scmp.lt.u32.totalorder %s500_s25, %s709_s7 }
 0x292   :  { %p506_p7 = pnand %p504_p6, %p501_p5 }
 0x294   :  { %509 = shalt.err (!%p506_p7)
}
 0x295   :  { %310 = dma.vmem_to_hbm [thread:$0]  %s308_s23, 128, %s709_s7, [#allocation3]  }
 0x296   :  { %510 = dma.done.wait [#allocation3], 128  }
 0x297   :  { %511 = vsyncadd [#allocation3], 4294967168 }
 0x298   :  { %314 = vsyncpa [#allocation3], 1 }

// kernel: tpu_custom_call.1
= control target key start
LH: loop header
LB: loop body
LE: loop exit
PB: predicated region body
PF: predicated region fallthrough
CT: control target
= control target key end

     0   :  { %v512_v2 = vmov 0.0|0.0   ;;  %vm513_vm0 = vmmov 0   ;;  %v514_v4 = vmov 0.0   ;;  %vm37_vm1 = vcmask 130048   ;;  %s702_s0 = inlined_call_operand.vmem [shape: f32[8,16], index: 0, kind: input, shape index: {}]   ;;  %s703_s1 = inlined_call_operand.vmem [shape: f32[16,128], index: 1, kind: input, shape index: {}]   ;;  %s704_s2 = inlined_call_operand.vmem [shape: f32[1,128], index: 2, kind: input, shape index: {}]   ;;  %s705_s3 = inlined_call_operand.vmem [shape: f32[128,128], index: 3, kind: input, shape index: {}]   ;;  %s706_s4 = inlined_call_operand.vmem [shape: f32[1,128], index: 4, kind: input, shape index: {}]   ;;  %s707_s5 = inlined_call_operand.vmem [shape: f32[128,32], index: 5, kind: input, shape index: {}]   ;;  %s708_s6 = inlined_call_operand.vmem [shape: f32[1,32], index: 6, kind: input, shape index: {}]   ;;  %s709_s7 = inlined_call_operand.hbm [shape: f32[8,32], index: 7, kind: output, shape index: {}]  }
   0x1   :  { %v28_v0 = vld [vmem:[%s703_s1] sm:$0xff]  ;;  %v29_v1 = vld [vmem:[%s703_s1 + $0x8] sm:$0xff]  ;;  %433 = vmatprep.subr.bf16.mxu0 %v512_v2  ;;  %360 = vmatprep.mubr.msk.f32.mxu0 %vm513_vm0, %v514_v4  ;;  %v114_v7 = vld [vmem:[%s705_s3 + $0x10] sm:$0xff] }
   0x2   :  { %v434_v3 = vpack.c.bf16 %v29_v1, %v28_v0  ;;  %v112_v5 = vld [vmem:[%s705_s3] sm:$0xff]  ;;  %v113_v6 = vld [vmem:[%s705_s3 + $0x8] sm:$0xff]  ;;  %436 = vmatprep.subr.bf16.mxu1 %v512_v2  ;;  %v115_v9 = vld [vmem:[%s705_s3 + $0x18] sm:$0xff]  ;;  %395 = vmatprep.mubr.msk.f32.mxu1 %vm513_vm0, %v514_v4 }
   0x3   :  { %v437_v8 = vpack.c.bf16 %v113_v6, %v112_v5  ;;  %v27_v10 = vld [vmem:[%s702_s0] sm:$0xff]  ;;  %v440_v11 = vpack.c.bf16 %v115_v9, %v114_v7  ;;  %v117_v13 = vld [vmem:[%s705_s3 + $0x28] sm:$0xff] }
   0x4   :  { %435 = vmatpush3.bf16.msra.mxu0 %v434_v3  ;;  %v116_v12 = vld [vmem:[%s705_s3 + $0x20] sm:$0xff] }
   0x5   :  { %438 = vmatpush3.bf16.msra.mxu1 %v437_v8  ;;  %460 = vmatprep.subr.bf16.mxu0 %v512_v2 }
   0x6   :  { %439 = vmatprep.subr.bf16.mxu1 %v512_v2 }
   0x7   :  { %361 = vmatmul.mubr.msk.f32.vlgmr.msra.gmra.mrb[0].mxu0 %vm37_vm1, %v27_v10 }
   0x8   :  { %12 = vsyncpa [#allocation3], 0  ;;  %430 = vmatprep.mubr.msk.f32.mxu0 %vm513_vm0, %v514_v4  ;;  %v443_v14 = vpack.c.bf16 %v117_v13, %v116_v12  ;;  %v118_v15 = vld [vmem:[%s705_s3 + $0x30] sm:$0xff]  ;;  %v119_v16 = vld [vmem:[%s705_s3 + $0x38] sm:$0xff]  ;;  %s515_s22 = smov [#allocation2]   ;;  %vm299_vm2 = vcmask 261120  }
   0x9   :  { %441 = vmatpush3.bf16.msra.mxu1 %v440_v11  ;;  %v446_v17 = vpack.c.bf16 %v119_v16, %v118_v15  ;;  %v120_v18 = vld [vmem:[%s705_s3 + $0x40] sm:$0xff]  ;;  %v121_v19 = vld [vmem:[%s705_s3 + $0x48] sm:$0xff]  ;;  %v122_v21 = vld [vmem:[%s705_s3 + $0x50] sm:$0xff]  ;;  %s307_s23 = sshll.u32 %s515_s22, 4  ;;  %s308_s23 = int_to_ptr.vmem [resolvable:$true] %s307_s23 }
   0xa   :  { %442 = vmatprep.subr.bf16.mxu1 %v512_v2  ;;  %v449_v20 = vpack.c.bf16 %v121_v19, %v120_v18  ;;  %v123_v22 = vld [vmem:[%s705_s3 + $0x58] sm:$0xff]  ;;  %v124_v24 = vld [vmem:[%s705_s3 + $0x60] sm:$0xff]  ;;  %v125_v25 = vld [vmem:[%s705_s3 + $0x68] sm:$0xff]  ;;  %p493_p1 = scmp.lt.s32.totalorder %s308_s23, %s308_s23 }
   0xb   :  { %v452_v23 = vpack.c.bf16 %v123_v22, %v122_v21  ;;  %v455_v26 = vpack.c.bf16 %v125_v25, %v124_v24  ;;  %v126_v27 = vld [vmem:[%s705_s3 + $0x70] sm:$0xff]  ;;  %v127_v28 = vld [vmem:[%s705_s3 + $0x78] sm:$0xff]  ;;  %v206_v30 = vld [vmem:[%s707_s5] sm:$0xff] }
   0xc   :  { %v458_v29 = vpack.c.bf16 %v127_v28, %v126_v27  ;;  %v207_v31 = vld [vmem:[%s707_s5 + $0x8] sm:$0xff]  ;;  %v208_v32 = vld [vmem:[%s707_s5 + $0x10] sm:$0xff]  ;;  %v209_v34 = vld [vmem:[%s707_s5 + $0x18] sm:$0xff] }
   0xd   :  { %444 = vmatpush3.bf16.msra.mxu1 %v443_v14  ;;  %v461_v33 = vpack.c.bf16 %v207_v31, %v206_v30  ;;  %v464_v35 = vpack.c.bf16 %v209_v34, %v208_v32  ;;  %v210_v36 = vld [vmem:[%s707_s5 + $0x20] sm:$0xff]  ;;  %v211_v37 = vld [vmem:[%s707_s5 + $0x28] sm:$0xff]  ;;  %v212_v39 = vld [vmem:[%s707_s5 + $0x30] sm:$0xff] }
   0xe   :  { %445 = vmatprep.subr.bf16.mxu1 %v512_v2  ;;  %v467_v38 = vpack.c.bf16 %v211_v37, %v210_v36  ;;  %v213_v40 = vld [vmem:[%s707_s5 + $0x38] sm:$0xff]  ;;  %v214_v42 = vld [vmem:[%s707_s5 + $0x40] sm:$0xff]  ;;  %v215_v43 = vld [vmem:[%s707_s5 + $0x48] sm:$0xff] }
   0xf   :  { %462 = vmatpush3.bf16.msra.mxu0 %v461_v33  ;;  %v470_v41 = vpack.c.bf16 %v213_v40, %v212_v39  ;;  %v473_v44 = vpack.c.bf16 %v215_v43, %v214_v42  ;;  %v216_v45 = vld [vmem:[%s707_s5 + $0x50] sm:$0xff]  ;;  %v217_v46 = vld [vmem:[%s707_s5 + $0x58] sm:$0xff]  ;;  %v218_v48 = vld [vmem:[%s707_s5 + $0x60] sm:$0xff] }
  0x10   :  { %463 = vmatprep.subr.bf16.mxu0 %v512_v2  ;;  %v476_v47 = vpack.c.bf16 %v217_v46, %v216_v45  ;;  %v219_v49 = vld [vmem:[%s707_s5 + $0x68] sm:$0xff]  ;;  %v315_v51 = vld [vmem:[%s704_s2] ss:$0 sm:$0xff]  ;;  %v220_v56 = vld [vmem:[%s707_s5 + $0x70] sm:$0xff] }
  0x11   :  { %447 = vmatpush3.bf16.msra.mxu1 %v446_v17  ;;  %v479_v50 = vpack.c.bf16 %v219_v49, %v218_v48  ;;  %v221_v57 = vld [vmem:[%s707_s5 + $0x78] sm:$0xff]  ;;  %v317_v59 = vld [vmem:[%s706_s4] ss:$0 sm:$0xff]  ;;  %s488_s5 = scalar_lea.vmem %s308_s23, 128 }
  0x12   :  { %448 = vmatprep.subr.bf16.mxu1 %v512_v2  ;;  %v482_v58 = vpack.c.bf16 %v221_v57, %v220_v56  ;;  %v318_v0 = vld [vmem:[%s708_s6] ss:$0 sm:$0xff]  ;;  %p489_p0 = scmp.ne.s32.totalorder %s308_s23, %s488_s5  ;;  %p494_p2 = scmp.lt.s32.totalorder %s488_s5, %s488_s5 }
  0x13   :  { %465 = vmatpush3.bf16.msra.mxu0 %v464_v35 }
  0x14   :  { %466 = vmatprep.subr.bf16.mxu0 %v512_v2  ;;  %p495_p3 = por %p494_p2, %p493_p1 }
  0x15   :  { %450 = vmatpush3.bf16.msra.mxu1 %v449_v20 }
  0x16   :  { %451 = vmatprep.subr.bf16.mxu1 %v512_v2  ;;  %p496_p4 = pnand %p495_p3, %p489_p0 }
  0x17   :  { %468 = vmatpush3.bf16.msra.mxu0 %v467_v38 }
  0x18   :  { %469 = vmatprep.subr.bf16.mxu0 %v512_v2 }
  0x19   :  { %453 = vmatpush3.bf16.msra.mxu1 %v452_v23 }
  0x1a   :  { %454 = vmatprep.subr.bf16.mxu1 %v512_v2 }
  0x1b   :  { %471 = vmatpush3.bf16.msra.mxu0 %v470_v41 }
  0x1c   :  { %472 = vmatprep.subr.bf16.mxu0 %v512_v2 }
  0x1d   :  { %456 = vmatpush3.bf16.msra.mxu1 %v455_v26 }
  0x1e   :  { %457 = vmatprep.subr.bf16.mxu1 %v512_v2 }
  0x1f   :  { %474 = vmatpush3.bf16.msra.mxu0 %v473_v44 }
  0x20   :  { %475 = vmatprep.subr.bf16.mxu0 %v512_v2 }
  0x21   :  { %459 = vmatpush3.bf16.msra.mxu1 %v458_v29 }
  0x23   :  { %477 = vmatpush3.bf16.msra.mxu0 %v476_v47 }
  0x24   :  { %478 = vmatprep.subr.bf16.mxu0 %v512_v2 }
  0x27   :  { %480 = vmatpush3.bf16.msra.mxu0 %v479_v50 }
  0x28   :  { %481 = vmatprep.subr.bf16.mxu0 %v512_v2 }
  0x2b   :  { %483 = vmatpush3.bf16.msra.mxu0 %v482_v58 }
  0xda   :  { %v107_v52 = vpop.f32.mrb[0].mxu0 }
  0xdb   :  { %v108_v53 = vadd.f32 %v315_v51, %v107_v52  ;;  %v362_v54 = vpop.f32.mrb[1].mxu0 }
  0xdd   :  { %v111_v55 = vmax.f32 %v108_v53, 0.0 }
  0xdf   :  { %396 = vmatmul.mubr.f32.vlgmr.msra.gmra.mrb[0].mxu1 %v111_v55 }
 0x1b2   :  { %v201_v60 = vpop.f32.mrb[0].mxu1 }
 0x1b3   :  { %v202_v61 = vadd.f32 %v317_v59, %v201_v60  ;;  %v397_v62 = vpop.f32.mrb[1].mxu1 }
 0x1b5   :  { %v205_v63 = vmax.f32 %v202_v61, 0.0 }
 0x1b7   :  { %431 = vmatmul.mubr.f32.vlgmr.msra.gmra.mrb[2].mxu0 %v205_v63 }
 0x28a   :  { %v295_v1 = vpop.f32.mrb[2].mxu0 }
 0x28b   :  { %v296_v2 = vadd.f32 %v318_v0, %v295_v1  ;;  %v432_v3 = vpop.f32.mrb[3].mxu0 }
 0x28d   :  { %300 = vst.msk [vmem:[#allocation2] sm:$0xff] %vm299_vm2, %v296_v2 }
 0x28e   :  { %499 = shalt.err (!%p496_p4)
}
 0x28f   :  { %s500_s25 = scalar_lea.hbm %s709_s7, 128 }
 0x290   :  { %p501_p5 = scmp.ne.s32.totalorder %s709_s7, %s500_s25  ;;  %p504_p6 = scmp.lt.u32.totalorder %s500_s25, %s709_s7 }
 0x292   :  { %p506_p7 = pnand %p504_p6, %p501_p5 }
 0x294   :  { %509 = shalt.err (!%p506_p7)
}
 0x295   :  { %310 = dma.vmem_to_hbm [thread:$0]  %s308_s23, 128, %s709_s7, [#allocation3]  }
 0x296   :  { %510 = dma.done.wait [#allocation3], 128  }
 0x297   :  { %511 = vsyncadd [#allocation3], 4294967168 }
 0x298   :  { %314 = vsyncpa [#allocation3], 1 }

</bundles_post_ra>
